<compile_context>
chip_gen: v7x
topology: tpu7x:2x2x1
jax: 0.10.0
libtpu: 0.0.40
codegen_flags: <defaults>
</compile_context>

<pallas_src>
import jax
import jax.numpy as jnp
from jax.experimental import pallas as pl
from jax.experimental.pallas import tpu as pltpu

EM = 32        # em_size
DS_NUM = 10    # ds_num in __init__
H1 = EM // 2   # 16
H2 = EM // 4   # 8
OUT = 2


def meta_predictor_kernel(ids_ref, sol_ref,
                          table_ref, w1s_ref,
                          w2t_ref, b2_ref,
                          w3t_ref, b3_ref,
                          out_ref):
    ids = ids_ref[...]                                            # (TB, 1) int32
    tb = ids.shape[0]

    # Embedding lookup folded through layer-1: one-hot @ (Demb @ W1[:EM] + b1).
    iota = jax.lax.broadcasted_iota(jnp.int32, (tb, DS_NUM), 1)
    onehot = (iota == ids).astype(jnp.float32)                    # (TB, DS_NUM)

    # Dominant stream stays in producer dtype (bf16 goes straight to the MXU).
    sol = sol_ref[...]                                            # (TB, 2*EM)

    # Layer 1 (bias already folded into `table`), f32 accumulation.
    h1 = (jnp.dot(onehot, table_ref[...], preferred_element_type=jnp.float32)
          + jnp.dot(sol, w1s_ref[...], preferred_element_type=jnp.float32))
    h1 = jnp.maximum(h1, 0.0)                                     # ReLU, (TB, H1)

    # One XLU transpose so the narrow tail runs lane-dense (batch on lanes).
    h1t = h1.T                                                    # (H1, TB)

    # Layer 2 (transposed): (H2, H1) @ (H1, TB) + (H2, 1)
    h2 = jnp.dot(w2t_ref[...], h1t, preferred_element_type=jnp.float32) + b2_ref[...]
    h2 = jnp.maximum(h2, 0.0)                                     # (H2, TB)

    # Layer 3 + Sigmoid (transposed): (OUT, H2) @ (H2, TB) + (OUT, 1)
    h3 = jnp.dot(w3t_ref[...], h2, preferred_element_type=jnp.float32) + b3_ref[...]
    out_ref[...] = jax.nn.sigmoid(h3).astype(out_ref.dtype)       # (OUT, TB) unmasked stores


def init_params(key):
    """Deterministic synthetic parameters (shapes match MetaPredictor.__init__)."""
    ks = jax.random.split(key, 7)
    demb = jax.random.normal(ks[0], (DS_NUM, EM), jnp.float32)          # nn.Embedding(10, 32)
    # nn.Linear weights stored pre-transposed as (in, out).
    w1 = jax.random.normal(ks[1], (3 * EM, H1), jnp.float32) * 0.1      # Linear(96, 16)
    b1 = jax.random.normal(ks[2], (1, H1), jnp.float32) * 0.1
    w2 = jax.random.normal(ks[3], (H1, H2), jnp.float32) * 0.1          # Linear(16, 8)
    b2 = jax.random.normal(ks[4], (1, H2), jnp.float32) * 0.1
    w3 = jax.random.normal(ks[5], (H2, OUT), jnp.float32) * 0.1         # Linear(8, 2)
    b3 = jax.random.normal(ks[6], (1, OUT), jnp.float32) * 0.1
    return dict(demb=demb, w1=w1, b1=b1, w2=w2, b2=b2, w3=w3, b3=b3)


def meta_predictor_forward(dataset_id, solution_emb, params, *, tb_max=1024):
    b = dataset_id.shape[0]
    f_sol = solution_emb.shape[1]                                 # 2*EM

    # Fold Demb and the first weight block + bias in the wrapper (exact, f32).
    table = params["demb"] @ params["w1"][:EM, :] + params["b1"]  # (DS_NUM, H1)
    # W1 block consumed by the streamed input, cast to its dtype so a bf16
    # producer streams bf16 end-to-end (accumulation stays f32 in-kernel).
    w1s = params["w1"][EM:, :].astype(solution_emb.dtype)         # (2*EM, H1)
    # Transposed tail weights / column biases.
    w2t = params["w2"].T                                          # (H2, H1)
    b2c = params["b2"].reshape(H2, 1)                             # (H2, 1)
    w3t = params["w3"].T                                          # (OUT, H2)
    b3c = params["b3"].reshape(OUT, 1)                            # (OUT, 1)

    # Batch tile: multiple of 128 (lane-aligned), capped at tb_max (sweep
    # 512/1024/2048; small tiles already reach ~85% of HBM roofline and keep
    # VMEM small on v5e (16 MiB scoped default) / v7x (64 MiB physical)).
    b128 = max(128, ((b + 127) // 128) * 128)
    tb = min(tb_max, b128)
    b_pad = ((b + tb - 1) // tb) * tb
    grid = (b_pad // tb,)

    ids = dataset_id.reshape(b, 1).astype(jnp.int32)
    if b_pad != b:
        # Padded ids = 0 (a valid index); pad rows produce garbage that is
        # sliced off.  Only pad when the batch is not tile-aligned so the
        # common aligned case streams solution_emb with zero extra copies.
        ids = jnp.pad(ids, ((0, b_pad - b), (0, 0)))
        sol = jnp.pad(solution_emb, ((0, b_pad - b), (0, 0)))
    else:
        sol = solution_emb

    const = lambda i: (0, 0)
    out_t = pl.pallas_call(
        meta_predictor_kernel,
        out_shape=jax.ShapeDtypeStruct((OUT, b_pad), jnp.float32),
        grid_spec=pltpu.PrefetchScalarGridSpec(
            num_scalar_prefetch=0,
            grid=grid,
            in_specs=[
                pl.BlockSpec((tb, 1), lambda i: (i, 0)),          # dataset ids
                pl.BlockSpec((tb, f_sol), lambda i: (i, 0)),      # solution_emb (big stream)
                pl.BlockSpec((DS_NUM, H1), const),                # folded table (resident)
                pl.BlockSpec((f_sol, H1), const),                 # W1 block for solution_emb
                pl.BlockSpec((H2, H1), const),                    # W2^T
                pl.BlockSpec((H2, 1), const),                     # b2 column
                pl.BlockSpec((OUT, H2), const),                   # W3^T
                pl.BlockSpec((OUT, 1), const),                    # b3 column
            ],
            out_specs=pl.BlockSpec((OUT, tb), lambda i: (0, i)),  # lane-dense output
        ),
        compiler_params=pltpu.CompilerParams(
            dimension_semantics=("parallel",)),
    )(ids, sol, table, w1s, w2t, b2c, w3t, b3c)

    # Tiny (2, B) -> (B, 2) transpose in the wrapper restores module semantics.
    return out_t[:, :b].T


def reference_forward(dataset_id, solution_emb, params):
    dt_emb = params["demb"][dataset_id]                           # embedding lookup
    h = jnp.concatenate([dt_emb, solution_emb.astype(jnp.float32)], axis=1)
    h = jnp.maximum(h @ params["w1"] + params["b1"], 0.0)
    h = jnp.maximum(h @ params["w2"] + params["b2"], 0.0)
    return jax.nn.sigmoid(h @ params["w3"] + params["b3"])


if __name__ == "__main__":
    key = jax.random.PRNGKey(0)
    k_param, k_id, k_sol = jax.random.split(key, 3)

    B = 8
    params = init_params(k_param)
    dataset_id = jax.random.randint(k_id, (B,), 0, DS_NUM, dtype=jnp.int32)
    # solution_emb must be (B, 2*em_size) so that cat([dt_emb, solution_emb])
    # matches Linear(3*em_size, ...) in self.output.
    solution_emb = jax.random.normal(k_sol, (B, 2 * EM), jnp.float32)

    out = meta_predictor_forward(dataset_id, solution_emb, params)
    out = jax.block_until_ready(out)

    ref = reference_forward(dataset_id, solution_emb, params)
    assert out.shape == (B, OUT) and out.dtype == jnp.float32
    assert jnp.allclose(out, ref, atol=1e-5, rtol=1e-5)

    print("KERNEL_OK")
</pallas_src>

<mosaic_0001>
module attributes {stable_mosaic.version = 11 : i64} {
  func.func @meta_predictor_kernel(%arg0: i32, %arg1: memref<128x1xi32, #tpu.memory_space<vmem>>, %arg2: memref<128x64xf32, #tpu.memory_space<vmem>>, %arg3: memref<10x16xf32, #tpu.memory_space<vmem>>, %arg4: memref<64x16xf32, #tpu.memory_space<vmem>>, %arg5: memref<8x16xf32, #tpu.memory_space<vmem>>, %arg6: memref<8x1xf32, #tpu.memory_space<vmem>>, %arg7: memref<2x8xf32, #tpu.memory_space<vmem>>, %arg8: memref<2x1xf32, #tpu.memory_space<vmem>>, %arg9: memref<2x128xf32, #tpu.memory_space<vmem>>) attributes {dimension_semantics = [#tpu.dimension_semantics<parallel>], iteration_bounds = array<i64: 1>, scalar_prefetch = 0 : i64, scratch_operands = 0 : i64, tpu.core_type = #tpu.core_type<tc>, window_params = [{transform_indices = @transform_0, window_bounds = array<i64: 128, 1>}, {transform_indices = @transform_1, window_bounds = array<i64: 128, 64>}, {pipeline_mode = #tpu.pipeline_mode<synchronous>, transform_indices = @transform_2, window_bounds = array<i64: 10, 16>}, {pipeline_mode = #tpu.pipeline_mode<synchronous>, transform_indices = @transform_3, window_bounds = array<i64: 64, 16>}, {pipeline_mode = #tpu.pipeline_mode<synchronous>, transform_indices = @transform_4, window_bounds = array<i64: 8, 16>}, {pipeline_mode = #tpu.pipeline_mode<synchronous>, transform_indices = @transform_5, window_bounds = array<i64: 8, 1>}, {pipeline_mode = #tpu.pipeline_mode<synchronous>, transform_indices = @transform_6, window_bounds = array<i64: 2, 8>}, {pipeline_mode = #tpu.pipeline_mode<synchronous>, transform_indices = @transform_7, window_bounds = array<i64: 2, 1>}, {transform_indices = @transform_8, window_bounds = array<i64: 2, 128>}]} {
    %c0 = arith.constant 0 : index
    %c0_0 = arith.constant 0 : index
    %0 = vector.load %arg1[%c0, %c0_0] : memref<128x1xi32, #tpu.memory_space<vmem>>, vector<128x1xi32>
    %1 = tpu.iota {dimensions = array<i32: 1>} : vector<128x10xi32>
    %2 = vector.broadcast %0 : vector<128x1xi32> to vector<128x10xi32>
    %3 = arith.cmpi eq, %1, %2 : vector<128x10xi32>
    %4 = arith.extui %3 : vector<128x10xi1> to vector<128x10xi32>
    %5 = arith.sitofp %4 : vector<128x10xi32> to vector<128x10xf32>
    %c0_1 = arith.constant 0 : index
    %c0_2 = arith.constant 0 : index
    %6 = vector.load %arg2[%c0_1, %c0_2] : memref<128x64xf32, #tpu.memory_space<vmem>>, vector<128x64xf32>
    %c0_3 = arith.constant 0 : index
    %c0_4 = arith.constant 0 : index
    %7 = vector.load %arg3[%c0_3, %c0_4] : memref<10x16xf32, #tpu.memory_space<vmem>>, vector<10x16xf32>
    %cst = arith.constant dense<0.000000e+00> : vector<128x16xf32>
    %8 = tpu.matmul %5, %7, %cst {dimension_numbers = #tpu.dot_dimension_numbers<[1], [0], [0], [1], [0, 0, 1, 1], [], []>} : vector<128x10xf32>, vector<10x16xf32>, vector<128x16xf32> -> vector<128x16xf32>
    %c0_5 = arith.constant 0 : index
    %c0_6 = arith.constant 0 : index
    %9 = vector.load %arg4[%c0_5, %c0_6] : memref<64x16xf32, #tpu.memory_space<vmem>>, vector<64x16xf32>
    %cst_7 = arith.constant dense<0.000000e+00> : vector<128x16xf32>
    %10 = tpu.matmul %6, %9, %cst_7 {dimension_numbers = #tpu.dot_dimension_numbers<[1], [0], [0], [1], [0, 0, 1, 1], [], []>} : vector<128x64xf32>, vector<64x16xf32>, vector<128x16xf32> -> vector<128x16xf32>
    %11 = arith.addf %8, %10 : vector<128x16xf32>
    %cst_8 = arith.constant 0.000000e+00 : f32
    %12 = vector.broadcast %cst_8 : f32 to vector<128x16xf32>
    %13 = arith.maximumf %11, %12 : vector<128x16xf32>
    %14 = tpu.transpose %13, [1, 0] : vector<128x16xf32> -> vector<16x128xf32>
    %c0_9 = arith.constant 0 : index
    %c0_10 = arith.constant 0 : index
    %15 = vector.load %arg5[%c0_9, %c0_10] : memref<8x16xf32, #tpu.memory_space<vmem>>, vector<8x16xf32>
    %cst_11 = arith.constant dense<0.000000e+00> : vector<8x128xf32>
    %16 = tpu.matmul %15, %14, %cst_11 {dimension_numbers = #tpu.dot_dimension_numbers<[1], [0], [0], [1], [0, 0, 1, 1], [], []>} : vector<8x16xf32>, vector<16x128xf32>, vector<8x128xf32> -> vector<8x128xf32>
    %c0_12 = arith.constant 0 : index
    %c0_13 = arith.constant 0 : index
    %17 = vector.load %arg6[%c0_12, %c0_13] : memref<8x1xf32, #tpu.memory_space<vmem>>, vector<8x1xf32>
    %18 = vector.broadcast %17 : vector<8x1xf32> to vector<8x128xf32>
    %19 = arith.addf %16, %18 : vector<8x128xf32>
    %cst_14 = arith.constant 0.000000e+00 : f32
    %20 = vector.broadcast %cst_14 : f32 to vector<8x128xf32>
    %21 = arith.maximumf %19, %20 : vector<8x128xf32>
    %c0_15 = arith.constant 0 : index
    %c0_16 = arith.constant 0 : index
    %22 = vector.load %arg7[%c0_15, %c0_16] : memref<2x8xf32, #tpu.memory_space<vmem>>, vector<2x8xf32>
    %cst_17 = arith.constant dense<0.000000e+00> : vector<2x128xf32>
    %23 = tpu.matmul %22, %21, %cst_17 {dimension_numbers = #tpu.dot_dimension_numbers<[1], [0], [0], [1], [0, 0, 1, 1], [], []>} : vector<2x8xf32>, vector<8x128xf32>, vector<2x128xf32> -> vector<2x128xf32>
    %c0_18 = arith.constant 0 : index
    %c0_19 = arith.constant 0 : index
    %24 = vector.load %arg8[%c0_18, %c0_19] : memref<2x1xf32, #tpu.memory_space<vmem>>, vector<2x1xf32>
    %25 = vector.broadcast %24 : vector<2x1xf32> to vector<2x128xf32>
    %26 = arith.addf %23, %25 : vector<2x128xf32>
    %27 = arith.negf %26 : vector<2x128xf32>
    %28 = math.exp %27 : vector<2x128xf32>
    %cst_20 = arith.constant 1.000000e+00 : f32
    %29 = vector.broadcast %cst_20 : f32 to vector<2x128xf32>
    %30 = arith.addf %29, %28 : vector<2x128xf32>
    %31 = arith.divf %29, %30 : vector<2x128xf32>
    %c0_21 = arith.constant 0 : index
    %c0_22 = arith.constant 0 : index
    %32 = vector.load %arg9[%c0_21, %c0_22] : memref<2x128xf32, #tpu.memory_space<vmem>>, vector<2x128xf32>
    tpu.vector_store %arg9[%c0_21, %c0_22], %31 {strides = array<i32>} : memref<2x128xf32, #tpu.memory_space<vmem>>, vector<2x128xf32>,
    return
  }
  func.func @transform_0(%arg0: i32) -> (i32, i32) {
    %c0_i32 = arith.constant 0 : i32
    %c0_i32_0 = arith.constant 0 : i32
    return %arg0, %c0_i32 : i32, i32
  }
  func.func @transform_1(%arg0: i32) -> (i32, i32) {
    %c0_i32 = arith.constant 0 : i32
    %c0_i32_0 = arith.constant 0 : i32
    return %arg0, %c0_i32 : i32, i32
  }
  func.func @transform_2(%arg0: i32) -> (i32, i32) {
    %c0_i32 = arith.constant 0 : i32
    %c0_i32_0 = arith.constant 0 : i32
    %c0_i32_1 = arith.constant 0 : i32
    return %c0_i32, %c0_i32_0 : i32, i32
  }
  func.func @transform_3(%arg0: i32) -> (i32, i32) {
    %c0_i32 = arith.constant 0 : i32
    %c0_i32_0 = arith.constant 0 : i32
    %c0_i32_1 = arith.constant 0 : i32
    return %c0_i32, %c0_i32_0 : i32, i32
  }
  func.func @transform_4(%arg0: i32) -> (i32, i32) {
    %c0_i32 = arith.constant 0 : i32
    %c0_i32_0 = arith.constant 0 : i32
    %c0_i32_1 = arith.constant 0 : i32
    return %c0_i32, %c0_i32_0 : i32, i32
  }
  func.func @transform_5(%arg0: i32) -> (i32, i32) {
    %c0_i32 = arith.constant 0 : i32
    %c0_i32_0 = arith.constant 0 : i32
    %c0_i32_1 = arith.constant 0 : i32
    return %c0_i32, %c0_i32_0 : i32, i32
  }
  func.func @transform_6(%arg0: i32) -> (i32, i32) {
    %c0_i32 = arith.constant 0 : i32
    %c0_i32_0 = arith.constant 0 : i32
    %c0_i32_1 = arith.constant 0 : i32
    return %c0_i32, %c0_i32_0 : i32, i32
  }
  func.func @transform_7(%arg0: i32) -> (i32, i32) {
    %c0_i32 = arith.constant 0 : i32
    %c0_i32_0 = arith.constant 0 : i32
    %c0_i32_1 = arith.constant 0 : i32
    return %c0_i32, %c0_i32_0 : i32, i32
  }
  func.func @transform_8(%arg0: i32) -> (i32, i32) {
    %c0_i32 = arith.constant 0 : i32
    %c0_i32_0 = arith.constant 0 : i32
    return %c0_i32, %arg0 : i32, i32
  }
}

</mosaic_0001>

<bundles_post_ra>
// kernel: tpu_custom_call.1
= control target key start
LH: loop header
LB: loop body
LE: loop exit
PB: predicated region body
PF: predicated region fallthrough
CT: control target
= control target key end

     0   :  { %v1153_v2 = vmov 0   ;;  %vm413_vm0 = vcmask 1041408   ;;  %vm170_vm1 = vcmask 523264   ;;  %vm1154_vm2 = vmmov 1   ;;  %s1457_s0 = inlined_call_operand.vmem [shape: s32[128,1], index: 0, kind: input, shape index: {}]   ;;  %s1458_s1 = inlined_call_operand.vmem [shape: f32[128,64], index: 1, kind: input, shape index: {}]   ;;  %s1459_s2 = inlined_call_operand.vmem [shape: f32[10,16], index: 2, kind: input, shape index: {}]   ;;  %s1460_s3 = inlined_call_operand.vmem [shape: f32[64,16], index: 3, kind: input, shape index: {}]   ;;  %s1461_s4 = inlined_call_operand.vmem [shape: f32[8,16], index: 4, kind: input, shape index: {}]   ;;  %s1462_s5 = inlined_call_operand.vmem [shape: f32[8,1], index: 5, kind: input, shape index: {}]   ;;  %s1463_s6 = inlined_call_operand.vmem [shape: f32[2,8], index: 6, kind: input, shape index: {}]   ;;  %s1464_s7 = inlined_call_operand.vmem [shape: f32[2,1], index: 7, kind: input, shape index: {}]   ;;  %s1465_s8 = inlined_call_operand.hbm [shape: f32[2,128], index: 8, kind: output, shape index: {}]  }
   0x1   :  { %v32_v0 = vld [vmem:[%s1457_s0 + $0x10] sm:$0xff]  ;;  %v30_v1 = vld [vmem:[%s1457_s0] sm:$0xff]  ;;  %1124 = vset.pattern.permute.xlu1 %v1153_v2  ;;  %1123 = vset.pattern.permute.xlu0 %v1153_v2  ;;  %v33_v3 = vld [vmem:[%s1457_s0 + $0x18] sm:$0xff] }
   0x2   :  { %55 = vperm.xlu1 %1124, %v32_v0   ;;  %49 = vperm.xlu0 %1123, %v30_v1   ;;  %v31_v4 = vld [vmem:[%s1457_s0 + $0x8] sm:$0xff]  ;;  %v162_v5 = vld [vmem:[%s1460_s3] sm:$0xff]  ;;  %v164_v7 = vld [vmem:[%s1460_s3 + $0x10] sm:$0xff] }
   0x3   :  { %v163_v6 = vld [vmem:[%s1460_s3 + $0x8] sm:$0xff]  ;;  %v34_v9 = vld [vmem:[%s1457_s0 + $0x20] sm:$0xff]  ;;  %v165_v11 = vld [vmem:[%s1460_s3 + $0x18] sm:$0xff] }
   0x4   :  { %v35_v8 = vld [vmem:[%s1457_s0 + $0x28] sm:$0xff]  ;;  %v1047_v10 = vpack.c.bf16 %v163_v6, %v162_v5  ;;  %v1051_v12 = vpack.c.bf16 %v165_v11, %v164_v7  ;;  %v166_v13 = vld [vmem:[%s1460_s3 + $0x20] sm:$0xff]  ;;  %vm1064_vm3 = vmpackc.low %vm413_vm0, %vm1154_vm2 }
   0x5   :  { %v167_v14 = vld [vmem:[%s1460_s3 + $0x28] sm:$0xff]  ;;  %v160_v15 = vld [vmem:[%s1459_s2] sm:$0xff] }
   0x6   :  { %58 = vperm.xlu1 %1124, %v33_v3   ;;  %52 = vperm.xlu0 %1123, %v31_v4   ;;  %v161_v16 = vld [vmem:[%s1459_s2 + $0x8] sm:$0x3]  ;;  %v144_v17 = vld [vmem:[%s1458_s1] sm:$0xff] }
   0x7   :  { %1048 = vmatprep.subr.bf16.mxu0 %v1047_v10  ;;  %v1063_v18 = vpack.c.bf16 %v161_v16, %v160_v15 }
   0xa   :  { %64 = vperm.xlu1 %1124, %v35_v8   ;;  %61 = vperm.xlu0 %1123, %v34_v9  }
   0xb   :  { %13 = vsyncpa [#allocation3], 0  ;;  %v37_v19 = vld [vmem:[%s1457_s0 + $0x38] sm:$0xff]  ;;  %v36_v20 = vld [vmem:[%s1457_s0 + $0x30] sm:$0xff]  ;;  %1050 = vmatpush3.bf16.msra.mxu0 %v1047_v10  ;;  %955 = vmatprep.mubr.msk.f32.mxu0 %vm170_vm1, %v144_v17  ;;  %v1055_v21 = vpack.c.bf16 %v167_v14, %v166_v13  ;;  %v1155_v32 = vmov 0.0   ;;  %v46_v51 = vlaneseq  ;;  %vm364_vm4 = vcmask 80896  }
   0xc   :  { %1052 = vmatprep.subr.bf16.mxu0 %v1051_v12  ;;  %1065 = vmatprep.subr.msk.bf16.mxu1 %vm1064_vm3, %v1063_v18  ;;  %v168_v22 = vld [vmem:[%s1460_s3 + $0x30] sm:$0xff]  ;;  %v169_v23 = vld [vmem:[%s1460_s3 + $0x38] sm:$0xff]  ;;  %v39_v24 = vld [vmem:[%s1457_s0 + $0x48] sm:$0xff] }
   0xd   :  { %1068 = vmatpush3.bf16.msk.msra.mxu1 %vm1064_vm3, %v1063_v18  ;;  %v38_v25 = vld [vmem:[%s1457_s0 + $0x40] sm:$0xff]  ;;  %v1059_v26 = vpack.c.bf16 %v169_v23, %v168_v22  ;;  %v41_v27 = vld [vmem:[%s1457_s0 + $0x58] sm:$0xff]  ;;  %v40_v28 = vld [vmem:[%s1457_s0 + $0x50] sm:$0xff]  ;;  %v1353_v52 = vand.u32 127, %v46_v51 }
   0xe   :  { %70 = vperm.xlu1 %1124, %v37_v19   ;;  %67 = vperm.xlu0 %1123, %v36_v20   ;;  %v43_v29 = vld [vmem:[%s1457_s0 + $0x68] sm:$0xff]  ;;  %v42_v30 = vld [vmem:[%s1457_s0 + $0x60] sm:$0xff]  ;;  %v146_v33 = vld [vmem:[%s1458_s1 + $0x10] sm:$0xff] }
   0xf   :  { %1054 = vmatpush3.bf16.msra.mxu0 %v1051_v12  ;;  %v145_v31 = vld [vmem:[%s1458_s1 + $0x8] sm:$0xff]  ;;  %v45_v34 = vld [vmem:[%s1457_s0 + $0x78] sm:$0xff]  ;;  %v44_v35 = vld [vmem:[%s1457_s0 + $0x70] sm:$0xff] }
  0x10   :  { %1056 = vmatprep.subr.bf16.mxu0 %v1055_v21  ;;  %v147_v36 = vld [vmem:[%s1458_s1 + $0x18] sm:$0xff]  ;;  %v148_v37 = vld [vmem:[%s1458_s1 + $0x20] sm:$0xff]  ;;  %v149_v40 = vld [vmem:[%s1458_s1 + $0x28] sm:$0xff] }
  0x11   :  { %v709_v38 = vld [vmem:[%s1464_s7] sm:$0x3]  ;;  %v150_v41 = vld [vmem:[%s1458_s1 + $0x30] sm:$0xff]  ;;  %v151_v42 = vld [vmem:[%s1458_s1 + $0x38] sm:$0xff] }
  0x12   :  { %76 = vperm.xlu1 %1124, %v39_v24   ;;  %73 = vperm.xlu0 %1123, %v38_v25   ;;  %v579_v39 = vld [vmem:[%s1462_s5] sm:$0xff]  ;;  %v153_v44 = vld [vmem:[%s1458_s1 + $0x48] sm:$0xff]  ;;  %v154_v45 = vld [vmem:[%s1458_s1 + $0x50] sm:$0xff] }
  0x13   :  { %1058 = vmatpush3.bf16.msra.mxu0 %v1055_v21  ;;  %v152_v43 = vld [vmem:[%s1458_s1 + $0x40] sm:$0xff]  ;;  %v155_v46 = vld [vmem:[%s1458_s1 + $0x58] sm:$0xff]  ;;  %v157_v48 = vld [vmem:[%s1458_s1 + $0x68] sm:$0xff]  ;;  %v1156_v21 = vmov 0.0|0.0  }
  0x14   :  { %1060 = vmatprep.subr.bf16.mxu0 %v1059_v26  ;;  %v156_v47 = vld [vmem:[%s1458_s1 + $0x60] sm:$0xff]  ;;  %v158_v49 = vld [vmem:[%s1458_s1 + $0x70] sm:$0xff]  ;;  %v159_v50 = vld [vmem:[%s1458_s1 + $0x78] sm:$0xff]  ;;  %1069 = vmatprep.subr.bf16.mxu1 %v1156_v21 }
  0x16   :  { %82 = vperm.xlu1 %1124, %v41_v27   ;;  %79 = vperm.xlu0 %1123, %v40_v28  }
  0x17   :  { %1062 = vmatpush3.bf16.msra.mxu0 %v1059_v26 }
  0x18   :  { %1042 = vmatprep.subr.mxu0 %v1155_v32 }
  0x1a   :  { %88 = vperm.xlu1 %1124, %v43_v29   ;;  %85 = vperm.xlu0 %1123, %v42_v30  }
  0x1b   :  { %956 = vmatmul.mubr.msk.f32.vlgmr.msra.gmra.mrb[0].mxu0 %vm170_vm1, %v145_v31 }
  0x1c   :  { %958 = vmatprep.mubr.msk.f32.mxu0 %vm170_vm1, %v146_v33 }
  0x1e   :  { %94 = vperm.xlu1 %1124, %v45_v34   ;;  %91 = vperm.xlu0 %1123, %v44_v35  }
  0x1f   :  { %959 = vmatmul.mubr.msk.f32.gmra.mrb[2].mxu0 %vm170_vm1, %v147_v36 }
  0x20   :  { %961 = vmatprep.mubr.msk.f32.mxu0 %vm170_vm1, %v148_v37 }
  0x22   :  { %712 = vperm.xlu1 %1124, %v709_v38   ;;  %582 = vperm.xlu0 %1123, %v579_v39  }
  0x23   :  { %962 = vmatmul.mubr.msk.f32.gmra.mrb[4].mxu0 %vm170_vm1, %v149_v40 }
  0x24   :  { %964 = vmatprep.mubr.msk.f32.mxu0 %vm170_vm1, %v150_v41 }
  0x27   :  { %965 = vmatmul.mubr.msk.f32.gmra.mrb[6].mxu0 %vm170_vm1, %v151_v42 }
  0x28   :  { %967 = vmatprep.mubr.msk.f32.mxu0 %vm170_vm1, %v152_v43 }
  0x2b   :  { %968 = vmatmul.mubr.msk.f32.gmra.mrb[8].mxu0 %vm170_vm1, %v153_v44 }
  0x2c   :  { %970 = vmatprep.mubr.msk.f32.mxu0 %vm170_vm1, %v154_v45 }
  0x2f   :  { %971 = vmatmul.mubr.msk.f32.gmra.mrb[10].mxu0 %vm170_vm1, %v155_v46 }
  0x30   :  { %973 = vmatprep.mubr.msk.f32.mxu0 %vm170_vm1, %v156_v47 }
  0x33   :  { %974 = vmatmul.mubr.msk.f32.gmra.mrb[12].mxu0 %vm170_vm1, %v157_v48 }
  0x34   :  { %976 = vmatprep.mubr.msk.f32.mxu0 %vm170_vm1, %v158_v49 }
  0x37   :  { %977 = vmatmul.mubr.msk.f32.gmra.mrb[14].mxu0 %vm170_vm1, %v159_v50 }
  0x81   :  { %v56_v53 = vpop.permute.xlu1 %55  ;;  %v50_v54 = vpop.permute.xlu0 %49 }
  0x82   :  { %vm96_vm5 = vcmp.eq.s32.totalorder %v1353_v52, %v50_v54  ;;  %vm98_vm6 = vcmp.eq.s32.totalorder %v1353_v52, %v56_v53 }
  0x83   :  { %v810_v55 = vsel %vm96_vm5, 1.0, %v1155_v32  ;;  %v812_v58 = vsel %vm98_vm6, 1.0, %v1155_v32  ;;  %vm585_vm6 = vcmask 130048  }
  0x84   :  { %983 = vmatprep.mubr.msk.f32.mxu1 %vm364_vm4, %v810_v55 }
  0x85   :  { %v59_v56 = vpop.permute.xlu1 %58  ;;  %v53_v57 = vpop.permute.xlu0 %52 }
  0x86   :  { %vm99_vm7 = vcmp.eq.s32.totalorder %v1353_v52, %v59_v56  ;;  %vm97_vm8 = vcmp.eq.s32.totalorder %v1353_v52, %v53_v57 }
  0x87   :  { %v811_v59 = vsel %vm97_vm8, 1.0, %v1155_v32  ;;  %v813_v60 = vsel %vm99_vm7, 1.0, %v1155_v32  ;;  %vm1410_vm7 = vmpackc.low %vm585_vm6, %vm585_vm6  ;;  %vm715_vm8 = vcmask 64512  }
  0x88   :  { %984 = vmatmul.mubr.msk.f32.vlgmr.msra.gmra.mrb[0].mxu1 %vm364_vm4, %v811_v59 }
  0x89   :  { %v65_v61 = vpop.permute.xlu1 %64  ;;  %v62_v62 = vpop.permute.xlu0 %61  ;;  %986 = vmatprep.mubr.msk.f32.mxu1 %vm364_vm4, %v812_v58 }
  0x8a   :  { %vm100_vm9 = vcmp.eq.s32.totalorder %v1353_v52, %v62_v62  ;;  %vm101_vm10 = vcmp.eq.s32.totalorder %v1353_v52, %v65_v61 }
  0x8b   :  { %v814_v63 = vsel %vm100_vm9, 1.0, %v1155_v32  ;;  %v815_v2 = vsel %vm101_vm10, 1.0, %v1155_v32 }
  0x8c   :  { %987 = vmatmul.mubr.msk.f32.gmra.mrb[2].mxu1 %vm364_vm4, %v813_v60 }
  0x8d   :  { %v71_v0 = vpop.permute.xlu1 %70  ;;  %989 = vmatprep.mubr.msk.f32.mxu1 %vm364_vm4, %v814_v63  ;;  %v68_v1 = vpop.permute.xlu0 %67 }
  0x8e   :  { %vm102_vm11 = vcmp.eq.s32.totalorder %v1353_v52, %v68_v1  ;;  %vm103_vm12 = vcmp.eq.s32.totalorder %v1353_v52, %v71_v0 }
  0x8f   :  { %v816_v3 = vsel %vm102_vm11, 1.0, %v1155_v32  ;;  %v817_v6 = vsel %vm103_vm12, 1.0, %v1155_v32 }
  0x90   :  { %990 = vmatmul.mubr.msk.f32.gmra.mrb[4].mxu1 %vm364_vm4, %v815_v2 }
  0x91   :  { %v77_v4 = vpop.permute.xlu1 %76  ;;  %992 = vmatprep.mubr.msk.f32.mxu1 %vm364_vm4, %v816_v3  ;;  %v74_v5 = vpop.permute.xlu0 %73 }
  0x92   :  { %vm104_vm13 = vcmp.eq.s32.totalorder %v1353_v52, %v74_v5  ;;  %vm105_vm14 = vcmp.eq.s32.totalorder %v1353_v52, %v77_v4 }
  0x93   :  { %v818_v7 = vsel %vm104_vm13, 1.0, %v1155_v32  ;;  %v819_v10 = vsel %vm105_vm14, 1.0, %v1155_v32 }
  0x94   :  { %993 = vmatmul.mubr.msk.f32.gmra.mrb[6].mxu1 %vm364_vm4, %v817_v6 }
  0x95   :  { %v83_v8 = vpop.permute.xlu1 %82  ;;  %995 = vmatprep.mubr.msk.f32.mxu1 %vm364_vm4, %v818_v7  ;;  %v80_v9 = vpop.permute.xlu0 %79 }
  0x96   :  { %vm106_vm15 = vcmp.eq.s32.totalorder %v1353_v52, %v80_v9  ;;  %vm107_vm0 = vcmp.eq.s32.totalorder %v1353_v52, %v83_v8 }
  0x97   :  { %v820_v11 = vsel %vm106_vm15, 1.0, %v1155_v32  ;;  %v821_v14 = vsel %vm107_vm0, 1.0, %v1155_v32 }
  0x98   :  { %996 = vmatmul.mubr.msk.f32.gmra.mrb[8].mxu1 %vm364_vm4, %v819_v10 }
  0x99   :  { %v89_v12 = vpop.permute.xlu1 %88  ;;  %998 = vmatprep.mubr.msk.f32.mxu1 %vm364_vm4, %v820_v11  ;;  %v86_v13 = vpop.permute.xlu0 %85 }
  0x9a   :  { %vm108_vm1 = vcmp.eq.s32.totalorder %v1353_v52, %v86_v13  ;;  %vm109_vm2 = vcmp.eq.s32.totalorder %v1353_v52, %v89_v12 }
  0x9b   :  { %v822_v15 = vsel %vm108_vm1, 1.0, %v1155_v32  ;;  %v823_v18 = vsel %vm109_vm2, 1.0, %v1155_v32 }
  0x9c   :  { %999 = vmatmul.mubr.msk.f32.gmra.mrb[10].mxu1 %vm364_vm4, %v821_v14 }
  0x9d   :  { %v95_v16 = vpop.permute.xlu1 %94  ;;  %1001 = vmatprep.mubr.msk.f32.mxu1 %vm364_vm4, %v822_v15  ;;  %v92_v17 = vpop.permute.xlu0 %91 }
  0x9e   :  { %vm110_vm3 = vcmp.eq.s32.totalorder %v1353_v52, %v92_v17  ;;  %vm111_vm5 = vcmp.eq.s32.totalorder %v1353_v52, %v95_v16 }
  0x9f   :  { %v824_v19 = vsel %vm110_vm3, 1.0, %v1155_v32  ;;  %v825_v20 = vsel %vm111_vm5, 1.0, %v1155_v32 }
  0xa0   :  { %1002 = vmatmul.mubr.msk.f32.gmra.mrb[12].mxu1 %vm364_vm4, %v823_v18 }
  0xa1   :  { %1004 = vmatprep.mubr.msk.f32.mxu1 %vm364_vm4, %v824_v19 }
  0xa4   :  { %1005 = vmatmul.mubr.msk.f32.gmra.mrb[14].mxu1 %vm364_vm4, %v825_v20  ;;  %vm1157_vm4 = vmmov 0  }
  0xa5   :  { %1039 = vmatprep.mubr.msk.f32.mxu1 %vm1157_vm4, %v1155_v32  ;;  %1044 = vmatprep.mubr.msk.f32.mxu0 %vm1157_vm4, %v1155_v32 }
  0xee   :  { %v957_v22 = vpop.f32.mrb[0].mxu0 }
  0xef   :  { %v285_v23 = vpop.f32.mrb[1].mxu0 }
  0xf2   :  { %v960_v24 = vpop.f32.mrb[2].mxu0 }
  0xf3   :  { %v295_v25 = vpop.f32.mrb[3].mxu0 }
  0xf6   :  { %v963_v26 = vpop.f32.mrb[4].mxu0 }
  0xf7   :  { %v305_v27 = vpop.f32.mrb[5].mxu0 }
  0xfa   :  { %v966_v28 = vpop.f32.mrb[6].mxu0 }
  0xfb   :  { %v315_v29 = vpop.f32.mrb[7].mxu0 }
  0xfe   :  { %v969_v30 = vpop.f32.mrb[8].mxu0 }
  0xff   :  { %v325_v31 = vpop.f32.mrb[9].mxu0 }
 0x102   :  { %v972_v33 = vpop.f32.mrb[10].mxu0 }
 0x103   :  { %v335_v34 = vpop.f32.mrb[11].mxu0 }
 0x106   :  { %v975_v35 = vpop.f32.mrb[12].mxu0 }
 0x107   :  { %v345_v36 = vpop.f32.mrb[13].mxu0 }
 0x10a   :  { %v978_v37 = vpop.f32.mrb[14].mxu0 }
 0x10b   :  { %v1404_v38 = vpop.f32.mrb[15].mxu0 }
 0x15b   :  { %v985_v39 = vpop.f32.mrb[0].mxu1 }
 0x15c   :  { %v489_v40 = vadd.f32 %v985_v39, %v957_v22  ;;  %v483_v41 = vpop.f32.mrb[1].mxu1  ;;  %v708_v39 = vld [vmem:[%s1463_s6] sm:$0x3] }
 0x15d   :  { %v484_v42 = vadd.f32 %v483_v41, %v285_v23 }
 0x15e   :  { %v563_v43 = vmax.f32 %v489_v40, 0.0 }
 0x15f   :  { %v562_v44 = vmax.f32 %v484_v42, 0.0  ;;  %v988_v45 = vpop.f32.mrb[2].mxu1 }
 0x160   :  { %v499_v46 = vadd.f32 %v988_v45, %v960_v24  ;;  %v493_v47 = vpop.f32.mrb[3].mxu1 }
 0x161   :  { %v1070_v49 = vpack.c.bf16 %v563_v43, %v562_v44  ;;  %v494_v50 = vadd.f32 %v493_v47, %v295_v25 }
 0x162   :  { %v565_v51 = vmax.f32 %v499_v46, 0.0 }
 0x163   :  { %v564_v32 = vmax.f32 %v494_v50, 0.0  ;;  %v991_v52 = vpop.f32.mrb[4].mxu1  ;;  %1072 = vmatpush3.bf16.xpose.msk.msra.mxu1 %vm1410_vm7, %v1070_v49 }
 0x164   :  { %v509_v53 = vadd.f32 %v991_v52, %v963_v26  ;;  %v503_v54 = vpop.f32.mrb[5].mxu1  ;;  %1073 = vmatprep.subr.bf16.mxu1 %v1156_v21 }
 0x165   :  { %v1074_v55 = vpack.c.bf16 %v565_v51, %v564_v32  ;;  %v504_v56 = vadd.f32 %v503_v54, %v305_v27 }
 0x166   :  { %v567_v57 = vmax.f32 %v509_v53, 0.0 }
 0x167   :  { %v566_v58 = vmax.f32 %v504_v56, 0.0  ;;  %v994_v59 = vpop.f32.mrb[6].mxu1 }
 0x168   :  { %v519_v60 = vadd.f32 %v994_v59, %v966_v28  ;;  %v513_v61 = vpop.f32.mrb[7].mxu1 }
 0x169   :  { %v1078_v62 = vpack.c.bf16 %v567_v57, %v566_v58  ;;  %v514_v63 = vadd.f32 %v513_v61, %v315_v29 }
 0x16a   :  { %v569_v0 = vmax.f32 %v519_v60, 0.0 }
 0x16b   :  { %v568_v1 = vmax.f32 %v514_v63, 0.0  ;;  %v997_v2 = vpop.f32.mrb[8].mxu1  ;;  %1076 = vmatpush3.bf16.xpose.msk.msra.mxu1 %vm1410_vm7, %v1074_v55 }
 0x16c   :  { %v529_v3 = vadd.f32 %v997_v2, %v969_v30  ;;  %v523_v4 = vpop.f32.mrb[9].mxu1  ;;  %1077 = vmatprep.subr.bf16.mxu1 %v1156_v21 }
 0x16d   :  { %v1082_v5 = vpack.c.bf16 %v569_v0, %v568_v1  ;;  %v524_v6 = vadd.f32 %v523_v4, %v325_v31 }
 0x16e   :  { %v571_v7 = vmax.f32 %v529_v3, 0.0 }
 0x16f   :  { %v570_v8 = vmax.f32 %v524_v6, 0.0  ;;  %v1000_v9 = vpop.f32.mrb[10].mxu1 }
 0x170   :  { %v539_v10 = vadd.f32 %v1000_v9, %v972_v33  ;;  %v533_v11 = vpop.f32.mrb[11].mxu1  ;;  %v578_v33 = vld [vmem:[%s1461_s4] sm:$0xff]  ;;  %s1158_s4 = smov [#allocation2]  }
 0x171   :  { %v1086_v12 = vpack.c.bf16 %v571_v7, %v570_v8  ;;  %v534_v13 = vadd.f32 %v533_v11, %v335_v34  ;;  %v583_v34 = vpop.permute.xlu0 %582  ;;  %s802_s22 = sshll.u32 %s1158_s4, 4  ;;  %s803_s22 = int_to_ptr.vmem [resolvable:$true] %s802_s22 }
 0x172   :  { %v573_v14 = vmax.f32 %v539_v10, 0.0  ;;  %s1129_s0 = scalar_lea.vmem %s803_s22, 32  ;;  %p1134_p1 = scmp.lt.s32.totalorder %s803_s22, %s803_s22 }
 0x173   :  { %v572_v15 = vmax.f32 %v534_v13, 0.0  ;;  %v1003_v16 = vpop.f32.mrb[12].mxu1  ;;  %1080 = vmatpush3.bf16.xpose.msk.msra.mxu1 %vm1410_vm7, %v1078_v62  ;;  %p1130_p0 = scmp.ne.s32.totalorder %s803_s22, %s1129_s0  ;;  %p1135_p2 = scmp.lt.s32.totalorder %s1129_s0, %s1129_s0 }
 0x174   :  { %v549_v17 = vadd.f32 %v1003_v16, %v975_v35  ;;  %v543_v18 = vpop.f32.mrb[13].mxu1  ;;  %1081 = vmatprep.subr.bf16.mxu1 %v1156_v21 }
 0x175   :  { %v1090_v19 = vpack.c.bf16 %v573_v14, %v572_v15  ;;  %v544_v20 = vadd.f32 %v543_v18, %v345_v36  ;;  %p1136_p3 = por %p1135_p2, %p1134_p1 }
 0x176   :  { %v575_v22 = vmax.f32 %v549_v17, 0.0 }
 0x177   :  { %v574_v23 = vmax.f32 %v544_v20, 0.0  ;;  %v1006_v24 = vpop.f32.mrb[14].mxu1  ;;  %p1137_p4 = pnand %p1136_p3, %p1130_p0 }
 0x178   :  { %v559_v25 = vadd.f32 %v1006_v24, %v978_v37  ;;  %v553_v26 = vpop.f32.mrb[15].mxu1 }
 0x179   :  { %v1094_v27 = vpack.c.bf16 %v575_v22, %v574_v23  ;;  %v554_v28 = vadd.f32 %v553_v26, %v1404_v38 }
 0x17a   :  { %v577_v29 = vmax.f32 %v559_v25, 0.0 }
 0x17b   :  { %v576_v30 = vmax.f32 %v554_v28, 0.0  ;;  %1084 = vmatpush3.bf16.xpose.msk.msra.mxu1 %vm1410_vm7, %v1082_v5 }
 0x17c   :  { %1085 = vmatprep.subr.bf16.mxu1 %v1156_v21 }
 0x17d   :  { %v1098_v31 = vpack.c.bf16 %v577_v29, %v576_v30 }
 0x183   :  { %1088 = vmatpush3.bf16.xpose.msk.msra.mxu1 %vm1410_vm7, %v1086_v12 }
 0x184   :  { %1089 = vmatprep.subr.bf16.mxu1 %v1156_v21 }
 0x18b   :  { %1092 = vmatpush3.bf16.xpose.msk.msra.mxu1 %vm1410_vm7, %v1090_v19 }
 0x18c   :  { %1093 = vmatprep.subr.bf16.mxu1 %v1156_v21 }
 0x193   :  { %1096 = vmatpush3.bf16.xpose.msk.msra.mxu1 %vm1410_vm7, %v1094_v27 }
 0x194   :  { %1097 = vmatprep.subr.bf16.mxu1 %v1156_v21  ;;  %v713_v21 = vpop.permute.xlu1 %712 }
 0x19b   :  { %1100 = vmatpush3.bf16.xpose.msk.msra.mxu1 %vm1410_vm7, %v1098_v31 }
 0x1a2   :  { %1040 = vmatmul.mubr.msk.f32.vlgmr.msra.gmra.mrb[16].mxu1 %vm585_vm6, %v578_v33 }
 0x275   :  { %v703_v35 = vpop.f32.mrb[16].mxu1 }
 0x276   :  { %v704_v36 = vadd.f32 %v703_v35, %v583_v34  ;;  %v1041_v37 = vpop.f32.mrb[17].mxu1 }
 0x278   :  { %v707_v38 = vmax.f32 %v704_v36, 0.0 }
 0x27a   :  { %1043 = vmatpush3.msra.mxu0 %v707_v38 }
 0x27b   :  { %1045 = vmatmul.mubr.msk.f32.vlgmr.msra.gmra.mrb[16].mxu0 %vm715_vm8, %v708_v39 }
 0x34e   :  { %v785_v40 = vpop.f32.mrb[16].mxu0 }
 0x34f   :  { %v786_v41 = vadd.f32 %v785_v40, %v713_v21  ;;  %v1046_v42 = vpop.f32.mrb[17].mxu0 }
 0x351   :  { %v877_v43 = vmul.f32 -1.442695, %v786_v41 }
 0x353   :  { %1125 = vpow2.f32 %v877_v43 }
 0x35d   :  { %v1126_v44 = vpop.eup %1125 }
 0x35e   :  { %v792_v45 = vadd.f32 1.0, %v1126_v44 }
 0x360   :  { %1127 = vrcp.f32 %v792_v45 }
 0x36a   :  { %v1128_v46 = vpop.eup %1127 }
 0x36b   :  { %795 = vst [vmem:[#allocation2] sm:$0x3] %v1128_v46 }
 0x36c   :  { %1140 = shalt.err (!%p1137_p4)
}
 0x36d   :  { %s1141_s24 = scalar_lea.hbm %s1465_s8, 32 }
 0x36e   :  { %p1142_p5 = scmp.ne.s32.totalorder %s1465_s8, %s1141_s24  ;;  %p1145_p6 = scmp.lt.u32.totalorder %s1141_s24, %s1465_s8 }
 0x370   :  { %p1147_p7 = pnand %p1145_p6, %p1142_p5 }
 0x372   :  { %1150 = shalt.err (!%p1147_p7)
}
 0x373   :  { %805 = dma.vmem_to_hbm [thread:$0]  %s803_s22, 32, %s1465_s8, [#allocation3]  }
 0x374   :  { %1151 = dma.done.wait [#allocation3], 32  }
 0x375   :  { %1152 = vsyncadd [#allocation3], 4294967264 }
 0x376   :  { %809 = vsyncpa [#allocation3], 1 }

</bundles_post_ra>
